<compile_context>
chip_gen: v7x
topology: tpu7x:2x2x1
jax: 0.10.0
libtpu: 0.0.40
codegen_flags: <defaults>
</compile_context>

<pallas_src>
import functools

import jax
import jax.numpy as jnp
from jax.experimental import pallas as pl
from jax.experimental.pallas import tpu as pltpu


def _round_up(x, m):
    return pl.cdiv(x, m) * m


def _facegrid_kernel(x_ref, w1_ref, b1_ref, w2_ref, b2_ref, o_ref):
    # x: (TB, D_in_pad) bf16, w1: (D_in_pad, H) bf16, b1: (1, H) f32,
    # w2: (H, D_out) bf16, b2: (1, D_out) f32, o: (TB, D_out) f32
    x = x_ref[...]
    h = jnp.dot(x, w1_ref[...], preferred_element_type=jnp.float32)   # MXU, f32 acc
    h = jnp.maximum(h + b1_ref[...], 0.0)                             # f32 epilogue (VPU)
    h = h.astype(w2_ref.dtype)                                        # bf16 back into MXU
    y = jnp.dot(h, w2_ref[...], preferred_element_type=jnp.float32)   # MXU, f32 acc
    y = jnp.maximum(y + b2_ref[...], 0.0)                             # f32 epilogue (VPU)
    o_ref[...] = y.astype(o_ref.dtype)


def prepare_params(w1, b1, w2, b2):
    """One-time parameter prep (hoisted out of the forward path).

    Takes PyTorch-style (out, in) weights, returns:
      w1_t: (d_in_pad, 256) bf16  -- transposed, zero-padded d_in -> multiple of 128
      b1  : (1, 256) f32
      w2_t: (256, 128) bf16
      b2  : (1, 128) f32
    """
    h_dim, d_in = w1.shape
    d_out = w2.shape[0]
    d_in_pad = int(_round_up(d_in, 128))

    w1_t = jnp.zeros((d_in_pad, h_dim), jnp.float32)
    w1_t = w1_t.at[:d_in].set(jnp.transpose(w1).astype(jnp.float32))
    w1_t = w1_t.astype(jnp.bfloat16)
    w2_t = jnp.transpose(w2).astype(jnp.bfloat16)
    b1_2d = b1.reshape(1, h_dim).astype(jnp.float32)
    b2_2d = b2.reshape(1, d_out).astype(jnp.float32)
    return w1_t, b1_2d, w2_t, b2_2d


@functools.partial(jax.jit, static_argnames=("max_batch_tile",))
def facegrid_forward(x, params, *, max_batch_tile=256):
    """x: (B, 1, G, G) or (B, G, G); params from prepare_params."""
    w1_t, b1_2d, w2_t, b2_2d = params
    d_in_pad, h_dim = w1_t.shape
    d_out = w2_t.shape[1]

    B = x.shape[0]
    x2 = x.reshape(B, -1).astype(jnp.bfloat16)          # flatten like x.view(B, -1)
    d_in = x2.shape[1]

    # Batch tile: multiple of 16 (bf16 sublane pack), capped so the double-buffered
    # x tile + resident weights stay far under v7x's VMEM budget.
    tb = int(min(max_batch_tile, _round_up(max(B, 1), 16)))
    b_pad = int(_round_up(B, tb))
    x2 = jnp.pad(x2, ((0, b_pad - B), (0, d_in_pad - d_in)))

    out = pl.pallas_call(
        _facegrid_kernel,
        out_shape=jax.ShapeDtypeStruct((b_pad, d_out), jnp.float32),
        grid=(b_pad // tb,),
        in_specs=[
            pl.BlockSpec((tb, d_in_pad), lambda i: (i, 0)),      # x tile (pipelined)
            pl.BlockSpec((d_in_pad, h_dim), lambda i: (0, 0)),   # w1 resident
            pl.BlockSpec((1, h_dim), lambda i: (0, 0)),          # b1 resident
            pl.BlockSpec((h_dim, d_out), lambda i: (0, 0)),      # w2 resident
            pl.BlockSpec((1, d_out), lambda i: (0, 0)),          # b2 resident
        ],
        out_specs=pl.BlockSpec((tb, d_out), lambda i: (i, 0)),
        compiler_params=pltpu.CompilerParams(
            dimension_semantics=("parallel",)),
    )(x2, w1_t, b1_2d, w2_t, b2_2d)
    return out[:B]


def init_params(grid_size=25, key=jax.random.PRNGKey(42)):
    """Deterministic synthetic params matching nn.Linear default init shapes."""
    d_in = grid_size * grid_size
    k1, k2, k3, k4 = jax.random.split(key, 4)
    bound1 = 1.0 / (d_in ** 0.5)
    bound2 = 1.0 / (256 ** 0.5)
    w1 = jax.random.uniform(k1, (256, d_in), jnp.float32, -bound1, bound1)
    b1 = jax.random.uniform(k2, (256,), jnp.float32, -bound1, bound1)
    w2 = jax.random.uniform(k3, (128, 256), jnp.float32, -bound2, bound2)
    b2 = jax.random.uniform(k4, (128,), jnp.float32, -bound2, bound2)
    return w1, b1, w2, b2


def reference_forward(x, params):
    """Pure-JAX reference mirroring the kernel's dtype handling (bf16 MXU inputs,
    f32 accumulation + epilogue)."""
    w1_t, b1_2d, w2_t, b2_2d = params
    B = x.shape[0]
    x2 = x.reshape(B, -1).astype(jnp.bfloat16)
    d_in = x2.shape[1]
    h = jnp.dot(x2, w1_t[:d_in], preferred_element_type=jnp.float32) + b1_2d
    h = jnp.maximum(h, 0.0).astype(jnp.bfloat16)
    y = jnp.dot(h, w2_t, preferred_element_type=jnp.float32) + b2_2d
    return jnp.maximum(y, 0.0)


def reference_forward_f32(x, w1, b1, w2, b2):
    """Full-precision reference of the original PyTorch module (loose check)."""
    B = x.shape[0]
    x2 = x.reshape(B, -1)
    h = jnp.maximum(x2 @ w1.T + b1, 0.0)
    y = jnp.maximum(h @ w2.T + b2, 0.0)
    return y


if __name__ == "__main__":
    grid_size = 25                    # FaceGridModel default
    B = 4
    key = jax.random.PRNGKey(0)
    kx, kp = jax.random.split(key)
    # Face-grid input is a binary-ish mask, NCHW (B, 1, 25, 25).
    x = jax.random.uniform(kx, (B, 1, grid_size, grid_size), jnp.float32)

    w1, b1, w2, b2 = init_params(grid_size, kp)
    params = prepare_params(w1, b1, w2, b2)   # one-time hoist of transpose/pad/cast

    out = facegrid_forward(x, params)
    out = jax.block_until_ready(out)

    ref = reference_forward(x, params)
    ref_f32 = reference_forward_f32(x, w1, b1, w2, b2)

    assert out.shape == (B, 128), out.shape
    assert jnp.allclose(out, ref, atol=1e-4, rtol=1e-4), "mismatch vs bf16 reference"
    assert jnp.allclose(out, ref_f32, atol=5e-2, rtol=5e-2), "mismatch vs f32 reference"

    print("KERNEL_OK")
</pallas_src>

<mosaic_0001>
module attributes {stable_mosaic.version = 11 : i64} {
  func.func @_facegrid_kernel(%arg0: i32, %arg1: memref<16x640xbf16, #tpu.memory_space<vmem>>, %arg2: memref<640x256xbf16, #tpu.memory_space<vmem>>, %arg3: memref<1x256xf32, #tpu.memory_space<vmem>>, %arg4: memref<256x128xbf16, #tpu.memory_space<vmem>>, %arg5: memref<1x128xf32, #tpu.memory_space<vmem>>, %arg6: memref<16x128xf32, #tpu.memory_space<vmem>>) attributes {dimension_semantics = [#tpu.dimension_semantics<parallel>], iteration_bounds = array<i64: 1>, scalar_prefetch = 0 : i64, scratch_operands = 0 : i64, tpu.core_type = #tpu.core_type<tc>, window_params = [{transform_indices = @transform_0, window_bounds = array<i64: 16, 640>}, {pipeline_mode = #tpu.pipeline_mode<synchronous>, transform_indices = @transform_1, window_bounds = array<i64: 640, 256>}, {pipeline_mode = #tpu.pipeline_mode<synchronous>, transform_indices = @transform_2, window_bounds = array<i64: 1, 256>}, {pipeline_mode = #tpu.pipeline_mode<synchronous>, transform_indices = @transform_3, window_bounds = array<i64: 256, 128>}, {pipeline_mode = #tpu.pipeline_mode<synchronous>, transform_indices = @transform_4, window_bounds = array<i64: 1, 128>}, {transform_indices = @transform_5, window_bounds = array<i64: 16, 128>}]} {
    %c0 = arith.constant 0 : index
    %c0_0 = arith.constant 0 : index
    %0 = vector.load %arg1[%c0, %c0_0] : memref<16x640xbf16, #tpu.memory_space<vmem>>, vector<16x640xbf16>
    %c0_1 = arith.constant 0 : index
    %c0_2 = arith.constant 0 : index
    %1 = vector.load %arg2[%c0_1, %c0_2] : memref<640x256xbf16, #tpu.memory_space<vmem>>, vector<640x256xbf16>
    %cst = arith.constant dense<0.000000e+00> : vector<16x256xf32>
    %2 = tpu.matmul %0, %1, %cst {dimension_numbers = #tpu.dot_dimension_numbers<[1], [0], [0], [1], [0, 0, 1, 1], [], []>} : vector<16x640xbf16>, vector<640x256xbf16>, vector<16x256xf32> -> vector<16x256xf32>
    %c0_3 = arith.constant 0 : index
    %c0_4 = arith.constant 0 : index
    %3 = vector.load %arg3[%c0_3, %c0_4] : memref<1x256xf32, #tpu.memory_space<vmem>>, vector<1x256xf32>
    %4 = vector.broadcast %3 : vector<1x256xf32> to vector<16x256xf32>
    %5 = arith.addf %2, %4 : vector<16x256xf32>
    %cst_5 = arith.constant 0.000000e+00 : f32
    %6 = vector.broadcast %cst_5 : f32 to vector<16x256xf32>
    %7 = arith.maximumf %5, %6 : vector<16x256xf32>
    %8 = arith.truncf %7 : vector<16x256xf32> to vector<16x256xbf16>
    %c0_6 = arith.constant 0 : index
    %c0_7 = arith.constant 0 : index
    %9 = vector.load %arg4[%c0_6, %c0_7] : memref<256x128xbf16, #tpu.memory_space<vmem>>, vector<256x128xbf16>
    %cst_8 = arith.constant dense<0.000000e+00> : vector<16x128xf32>
    %10 = tpu.matmul %8, %9, %cst_8 {dimension_numbers = #tpu.dot_dimension_numbers<[1], [0], [0], [1], [0, 0, 1, 1], [], []>} : vector<16x256xbf16>, vector<256x128xbf16>, vector<16x128xf32> -> vector<16x128xf32>
    %c0_9 = arith.constant 0 : index
    %c0_10 = arith.constant 0 : index
    %11 = vector.load %arg5[%c0_9, %c0_10] : memref<1x128xf32, #tpu.memory_space<vmem>>, vector<1x128xf32>
    %12 = vector.broadcast %11 : vector<1x128xf32> to vector<16x128xf32>
    %13 = arith.addf %10, %12 : vector<16x128xf32>
    %cst_11 = arith.constant 0.000000e+00 : f32
    %14 = vector.broadcast %cst_11 : f32 to vector<16x128xf32>
    %15 = arith.maximumf %13, %14 : vector<16x128xf32>
    %c0_12 = arith.constant 0 : index
    %c0_13 = arith.constant 0 : index
    %16 = vector.load %arg6[%c0_12, %c0_13] : memref<16x128xf32, #tpu.memory_space<vmem>>, vector<16x128xf32>
    tpu.vector_store %arg6[%c0_12, %c0_13], %15 {strides = array<i32>} : memref<16x128xf32, #tpu.memory_space<vmem>>, vector<16x128xf32>,
    return
  }
  func.func @transform_0(%arg0: i32) -> (i32, i32) {
    %c0_i32 = arith.constant 0 : i32
    %c0_i32_0 = arith.constant 0 : i32
    return %arg0, %c0_i32 : i32, i32
  }
  func.func @transform_1(%arg0: i32) -> (i32, i32) {
    %c0_i32 = arith.constant 0 : i32
    %c0_i32_0 = arith.constant 0 : i32
    %c0_i32_1 = arith.constant 0 : i32
    return %c0_i32, %c0_i32_0 : i32, i32
  }
  func.func @transform_2(%arg0: i32) -> (i32, i32) {
    %c0_i32 = arith.constant 0 : i32
    %c0_i32_0 = arith.constant 0 : i32
    %c0_i32_1 = arith.constant 0 : i32
    return %c0_i32, %c0_i32_0 : i32, i32
  }
  func.func @transform_3(%arg0: i32) -> (i32, i32) {
    %c0_i32 = arith.constant 0 : i32
    %c0_i32_0 = arith.constant 0 : i32
    %c0_i32_1 = arith.constant 0 : i32
    return %c0_i32, %c0_i32_0 : i32, i32
  }
  func.func @transform_4(%arg0: i32) -> (i32, i32) {
    %c0_i32 = arith.constant 0 : i32
    %c0_i32_0 = arith.constant 0 : i32
    %c0_i32_1 = arith.constant 0 : i32
    return %c0_i32, %c0_i32_0 : i32, i32
  }
  func.func @transform_5(%arg0: i32) -> (i32, i32) {
    %c0_i32 = arith.constant 0 : i32
    %c0_i32_0 = arith.constant 0 : i32
    return %arg0, %c0_i32 : i32, i32
  }
}

</mosaic_0001>

<bundles_post_ra>
// kernel: facegrid_forward.1
= control target key start
LH: loop header
LB: loop body
LE: loop exit
PB: predicated region body
PF: predicated region fallthrough
CT: control target
= control target key end

     0   :  { %10 = vsyncpa [#allocation3], 0  ;;  %s1186_s18 = smov [#allocation2]   ;;  %s1307_s0 = inlined_call_operand.vmem [shape: bf16[16,640], index: 0, kind: input, shape index: {}]   ;;  %s1308_s1 = inlined_call_operand.hbm [shape: bf16[640,256], index: 1, kind: input, shape index: {}]   ;;  %s1309_s2 = inlined_call_operand.vmem [shape: f32[1,256], index: 2, kind: input, shape index: {}]   ;;  %s1310_s3 = inlined_call_operand.vmem [shape: bf16[256,128], index: 3, kind: input, shape index: {}]   ;;  %s1311_s4 = inlined_call_operand.vmem [shape: f32[1,128], index: 4, kind: input, shape index: {}]   ;;  %s1312_s5 = inlined_call_operand.vmem [shape: f32[16,128], index: 5, kind: output, shape index: {}]  }
   0x1   :  { %s18_s19 = sshll.u32 %s1186_s18, 4  ;;  %s1162_s22 = scalar_lea.hbm %s1308_s1, 10240  ;;  %s19_s19 = int_to_ptr.vmem [resolvable:$true] %s18_s19 }
   0x2   :  { %p1163_p0 = scmp.ne.s32.totalorder %s1308_s1, %s1162_s22  ;;  %p1166_p1 = scmp.lt.u32.totalorder %s1162_s22, %s1308_s1 }
   0x4   :  { %p1168_p2 = pnand %p1166_p1, %p1163_p0 }
   0x6   :  { %1171 = shalt.err (!%p1168_p2)
}
   0x7   :  { %s1172_s27 = scalar_lea.vmem %s19_s19, 10240  ;;  %p1177_p4 = scmp.lt.s32.totalorder %s19_s19, %s19_s19 }
   0x8   :  { %p1173_p3 = scmp.ne.s32.totalorder %s19_s19, %s1172_s27  ;;  %p1178_p5 = scmp.lt.s32.totalorder %s1172_s27, %s1172_s27 }
   0xa   :  { %p1179_p6 = por %p1178_p5, %p1177_p4 }
   0xc   :  { %p1180_p7 = pnand %p1179_p6, %p1173_p3 }
   0xe   :  { %1183 = shalt.err (!%p1180_p7)
}
   0xf   :  { %s1187_s28 = smov 128   ;;  %s1188_s29 = smov 8  }
  0x10   :  { %24 = dma.hbm_to_vmem [thread:$0]  %s1308_s1, 10240, %s19_s19, [#allocation3], %s1187_s28, %s1187_s28, %s1188_s29  }
  0x11   :  { %1184 = dma.done.wait [#allocation3], 10240  }
  0x12   :  { %1185 = vsyncadd [#allocation3], 4294957056  ;;  %v1019_v0 = vld [vmem:[#allocation2 + $0x104] ss:$8 sps:$4 sm:$0xff]   ;;  %v1021_v1 = vld [vmem:[#allocation2 + $0x100] ss:$8 sps:$4 sm:$0xff]  }
  0x13   :  { %602 = vmatprep.subr.bf16.mxu0 %v1019_v0  ;;  %v1022_v2 = vld [vmem:[#allocation2 + $0x114] ss:$8 sps:$4 sm:$0xff]   ;;  %v1024_v3 = vld [vmem:[#allocation2 + $0x110] ss:$8 sps:$4 sm:$0xff]   ;;  %v1025_v4 = vld [vmem:[#allocation2 + $0x124] ss:$8 sps:$4 sm:$0xff]  }
  0x14   :  { %603 = vmatpush1.bf16.msra.mxu0 %v1021_v1  ;;  %v1027_v5 = vld [vmem:[#allocation2 + $0x120] ss:$8 sps:$4 sm:$0xff]   ;;  %v1028_v6 = vld [vmem:[#allocation2 + $0x134] ss:$8 sps:$4 sm:$0xff]   ;;  %v1040_v7 = vld [vmem:[#allocation2 + $0x4] ss:$8 sps:$4 sm:$0xff]  }
  0x15   :  { %604 = vmatprep.subr.bf16.mxu0 %v1022_v2  ;;  %v1042_v8 = vld [vmem:[#allocation2] ss:$8 sps:$4 sm:$0xff]   ;;  %v1030_v9 = vld [vmem:[#allocation2 + $0x130] ss:$8 sps:$4 sm:$0xff]   ;;  %v1031_v10 = vld [vmem:[#allocation2 + $0x144] ss:$8 sps:$4 sm:$0xff]   ;;  %559 = vmatprep.subr.bf16.mxu1 %v1040_v7 }
  0x16   :  { %v1046_v11 = vld [vmem:[#allocation2 + $0x14] ss:$8 sps:$4 sm:$0xff]   ;;  %560 = vmatpush1.bf16.msra.mxu1 %v1042_v8  ;;  %v1048_v12 = vld [vmem:[#allocation2 + $0x10] ss:$8 sps:$4 sm:$0xff]   ;;  %v1033_v13 = vld [vmem:[#allocation2 + $0x140] ss:$8 sps:$4 sm:$0xff]  }
  0x17   :  { %561 = vmatprep.subr.bf16.mxu1 %v1046_v11  ;;  %v1052_v14 = vld [vmem:[#allocation2 + $0x24] ss:$8 sps:$4 sm:$0xff]   ;;  %v1034_v15 = vld [vmem:[#allocation2 + $0x154] ss:$8 sps:$4 sm:$0xff]   ;;  %v1054_v16 = vld [vmem:[#allocation2 + $0x20] ss:$8 sps:$4 sm:$0xff]  }
  0x18   :  { %605 = vmatpush1.bf16.msra.mxu0 %v1024_v3  ;;  %v1058_v17 = vld [vmem:[#allocation2 + $0x34] ss:$8 sps:$4 sm:$0xff]   ;;  %v1036_v18 = vld [vmem:[#allocation2 + $0x150] ss:$8 sps:$4 sm:$0xff]   ;;  %v1037_v19 = vld [vmem:[#allocation2 + $0x164] ss:$8 sps:$4 sm:$0xff]  }
  0x19   :  { %606 = vmatprep.subr.bf16.mxu0 %v1025_v4  ;;  %v1060_v20 = vld [vmem:[#allocation2 + $0x30] ss:$8 sps:$4 sm:$0xff]   ;;  %v1064_v21 = vld [vmem:[#allocation2 + $0x44] ss:$8 sps:$4 sm:$0xff]   ;;  %v1039_v22 = vld [vmem:[#allocation2 + $0x160] ss:$8 sps:$4 sm:$0xff]  }
  0x1a   :  { %562 = vmatpush1.bf16.msra.mxu1 %v1048_v12  ;;  %v1043_v23 = vld [vmem:[#allocation2 + $0x174] ss:$8 sps:$4 sm:$0xff]   ;;  %v1066_v24 = vld [vmem:[#allocation2 + $0x40] ss:$8 sps:$4 sm:$0xff]   ;;  %v1045_v26 = vld [vmem:[#allocation2 + $0x170] ss:$8 sps:$4 sm:$0xff]  }
  0x1b   :  { %563 = vmatprep.subr.bf16.mxu1 %v1052_v14  ;;  %v1070_v25 = vld [vmem:[#allocation2 + $0x54] ss:$8 sps:$4 sm:$0xff]   ;;  %v1049_v27 = vld [vmem:[#allocation2 + $0x184] ss:$8 sps:$4 sm:$0xff]   ;;  %v1072_v28 = vld [vmem:[#allocation2 + $0x50] ss:$8 sps:$4 sm:$0xff]  }
  0x1c   :  { %607 = vmatpush1.bf16.msra.mxu0 %v1027_v5  ;;  %v1076_v29 = vld [vmem:[#allocation2 + $0x64] ss:$8 sps:$4 sm:$0xff]   ;;  %v1051_v30 = vld [vmem:[#allocation2 + $0x180] ss:$8 sps:$4 sm:$0xff]   ;;  %v1055_v31 = vld [vmem:[#allocation2 + $0x194] ss:$8 sps:$4 sm:$0xff]  }
  0x1d   :  { %608 = vmatprep.subr.bf16.mxu0 %v1028_v6  ;;  %v1078_v32 = vld [vmem:[#allocation2 + $0x60] ss:$8 sps:$4 sm:$0xff]   ;;  %v1082_v33 = vld [vmem:[#allocation2 + $0x74] ss:$8 sps:$4 sm:$0xff]   ;;  %v1057_v34 = vld [vmem:[#allocation2 + $0x190] ss:$8 sps:$4 sm:$0xff]  }
  0x1e   :  { %564 = vmatpush1.bf16.msra.mxu1 %v1054_v16  ;;  %v1099_v35 = vld [vmem:[%s1307_s0 + $0xc] ss:$20 sps:$4 sm:$0xff]   ;;  %v1084_v37 = vld [vmem:[#allocation2 + $0x70] ss:$8 sps:$4 sm:$0xff]   ;;  %v1067_v40 = vld [vmem:[#allocation2 + $0x1b4] ss:$8 sps:$4 sm:$0xff]  }
  0x1f   :  { %565 = vmatprep.subr.bf16.mxu1 %v1058_v17  ;;  %v1061_v36 = vld [vmem:[#allocation2 + $0x1a4] ss:$8 sps:$4 sm:$0xff]   ;;  %634 = vmatprep.mubr.bf16.mxu0 %v1099_v35  ;;  %v1063_v39 = vld [vmem:[#allocation2 + $0x1a0] ss:$8 sps:$4 sm:$0xff]   ;;  %v1094_v42 = vld [vmem:[#allocation2 + $0x94] ss:$8 sps:$4 sm:$0xff]  }
  0x20   :  { %609 = vmatpush1.bf16.msra.mxu0 %v1030_v9  ;;  %v1088_v38 = vld [vmem:[#allocation2 + $0x84] ss:$8 sps:$4 sm:$0xff]   ;;  %v1090_v41 = vld [vmem:[#allocation2 + $0x80] ss:$8 sps:$4 sm:$0xff]   ;;  %v1069_v43 = vld [vmem:[#allocation2 + $0x1b0] ss:$8 sps:$4 sm:$0xff]  }
  0x21   :  { %610 = vmatprep.subr.bf16.mxu0 %v1031_v10  ;;  %v1073_v44 = vld [vmem:[#allocation2 + $0x1c4] ss:$8 sps:$4 sm:$0xff]   ;;  %v1096_v45 = vld [vmem:[#allocation2 + $0x90] ss:$8 sps:$4 sm:$0xff]   ;;  %v1075_v47 = vld [vmem:[#allocation2 + $0x1c0] ss:$8 sps:$4 sm:$0xff]  }
  0x22   :  { %566 = vmatpush1.bf16.msra.mxu1 %v1060_v20  ;;  %v1103_v46 = vld [vmem:[#allocation2 + $0xa4] ss:$8 sps:$4 sm:$0xff]   ;;  %v1079_v48 = vld [vmem:[#allocation2 + $0x1d4] ss:$8 sps:$4 sm:$0xff]   ;;  %v1105_v49 = vld [vmem:[#allocation2 + $0xa0] ss:$8 sps:$4 sm:$0xff]  }
  0x23   :  { %567 = vmatprep.subr.bf16.mxu1 %v1064_v21  ;;  %v1109_v50 = vld [vmem:[#allocation2 + $0xb4] ss:$8 sps:$4 sm:$0xff]   ;;  %v1081_v51 = vld [vmem:[#allocation2 + $0x1d0] ss:$8 sps:$4 sm:$0xff]   ;;  %v1085_v52 = vld [vmem:[#allocation2 + $0x1e4] ss:$8 sps:$4 sm:$0xff]  }
  0x24   :  { %611 = vmatpush1.bf16.msra.mxu0 %v1033_v13  ;;  %v1111_v53 = vld [vmem:[#allocation2 + $0xb0] ss:$8 sps:$4 sm:$0xff]   ;;  %v1115_v54 = vld [vmem:[#allocation2 + $0xc4] ss:$8 sps:$4 sm:$0xff]   ;;  %v1087_v56 = vld [vmem:[#allocation2 + $0x1e0] ss:$8 sps:$4 sm:$0xff]  }
  0x25   :  { %612 = vmatprep.subr.bf16.mxu0 %v1034_v15  ;;  %v1141_v55 = vld [vmem:[%s1307_s0 + $0x4] ss:$20 sps:$4 sm:$0xff]   ;;  %v1091_v57 = vld [vmem:[#allocation2 + $0x1f4] ss:$8 sps:$4 sm:$0xff]   ;;  %v1117_v58 = vld [vmem:[#allocation2 + $0xc0] ss:$8 sps:$4 sm:$0xff]  }
  0x26   :  { %568 = vmatpush1.bf16.msra.mxu1 %v1066_v24  ;;  %591 = vmatprep.mubr.bf16.mxu1 %v1141_v55  ;;  %v1121_v59 = vld [vmem:[#allocation2 + $0xd4] ss:$8 sps:$4 sm:$0xff]   ;;  %v1093_v60 = vld [vmem:[#allocation2 + $0x1f0] ss:$8 sps:$4 sm:$0xff]   ;;  %v1102_v62 = vld [vmem:[#allocation2 + $0x204] ss:$8 sps:$4 sm:$0xff]  }
  0x27   :  { %569 = vmatprep.subr.bf16.mxu1 %v1070_v25  ;;  %v1097_v61 = vld [vmem:[%s1307_s0 + $0x8] ss:$20 sps:$4 sm:$0xff]   ;;  %v1123_v0 = vld [vmem:[#allocation2 + $0xd0] ss:$8 sps:$4 sm:$0xff]   ;;  %v1127_v1 = vld [vmem:[#allocation2 + $0xe4] ss:$8 sps:$4 sm:$0xff]  }
  0x28   :  { %613 = vmatpush1.bf16.msra.mxu0 %v1036_v18  ;;  %v1100_v63 = vld [vmem:[#allocation2 + $0x200] ss:$8 sps:$4 sm:$0xff]   ;;  %v1108_v2 = vld [vmem:[#allocation2 + $0x214] ss:$8 sps:$4 sm:$0xff]   ;;  %v1106_v4 = vld [vmem:[#allocation2 + $0x210] ss:$8 sps:$4 sm:$0xff]  }
  0x29   :  { %614 = vmatprep.subr.bf16.mxu0 %v1037_v19  ;;  %v1129_v3 = vld [vmem:[#allocation2 + $0xe0] ss:$8 sps:$4 sm:$0xff]   ;;  %v1133_v5 = vld [vmem:[#allocation2 + $0xf4] ss:$8 sps:$4 sm:$0xff]   ;;  %v1114_v6 = vld [vmem:[#allocation2 + $0x224] ss:$8 sps:$4 sm:$0xff]  }
  0x2a   :  { %570 = vmatpush1.bf16.msra.mxu1 %v1072_v28  ;;  %v1135_v7 = vld [vmem:[#allocation2 + $0xf0] ss:$8 sps:$4 sm:$0xff]   ;;  %v1189_v8 = vmov 0   ;;  %v1146_v9 = vld [vmem:[%s1310_s3 + $0x40] sm:$0xff]   ;;  %v1120_v11 = vld [vmem:[#allocation2 + $0x234] ss:$8 sps:$4 sm:$0xff]  }
  0x2b   :  { %571 = vmatprep.subr.bf16.mxu1 %v1076_v29  ;;  %v1112_v10 = vld [vmem:[#allocation2 + $0x220] ss:$8 sps:$4 sm:$0xff]   ;;  %v1118_v15 = vld [vmem:[#allocation2 + $0x230] ss:$8 sps:$4 sm:$0xff]   ;;  %v1126_v16 = vld [vmem:[#allocation2 + $0x244] ss:$8 sps:$4 sm:$0xff]  }
  0x2c   :  { %615 = vmatpush1.bf16.msra.mxu0 %v1039_v22  ;;  %v1139_v12 = vld [vmem:[%s1307_s0] ss:$20 sps:$4 sm:$0xff]   ;;  %v1148_v14 = vld [vmem:[%s1310_s3 + $0x48] sm:$0xff]   ;;  %v1152_v22 = vld [vmem:[%s1310_s3 + $0x58] sm:$0xff]  }
  0x2d   :  { %616 = vmatprep.subr.bf16.mxu0 %v1043_v23  ;;  %v1147_v13 = vld [vmem:[%s1310_s3] sm:$0xff]   ;;  %v1149_v17 = vld [vmem:[%s1310_s3 + $0x8] sm:$0xff]   ;;  %v1150_v18 = vld [vmem:[%s1310_s3 + $0x50] sm:$0xff]  }
  0x2e   :  { %572 = vmatpush1.bf16.msra.mxu1 %v1078_v32  ;;  %v1124_v19 = vld [vmem:[#allocation2 + $0x240] ss:$8 sps:$4 sm:$0xff]   ;;  %v1132_v20 = vld [vmem:[#allocation2 + $0x254] ss:$8 sps:$4 sm:$0xff]   ;;  %v1130_v23 = vld [vmem:[#allocation2 + $0x250] ss:$8 sps:$4 sm:$0xff]  }
  0x2f   :  { %573 = vmatprep.subr.bf16.mxu1 %v1082_v33  ;;  %v1151_v21 = vld [vmem:[%s1310_s3 + $0x10] sm:$0xff]   ;;  %v1138_v24 = vld [vmem:[#allocation2 + $0x264] ss:$8 sps:$4 sm:$0xff]   ;;  %v1153_v25 = vld [vmem:[%s1310_s3 + $0x18] sm:$0xff]  }
  0x30   :  { %617 = vmatpush1.bf16.msra.mxu0 %v1045_v26  ;;  %v1136_v26 = vld [vmem:[#allocation2 + $0x260] ss:$8 sps:$4 sm:$0xff]   ;;  %v1142_v28 = vld [vmem:[#allocation2 + $0x270] ss:$8 sps:$4 sm:$0xff]  }
  0x31   :  { %618 = vmatprep.subr.bf16.mxu0 %v1049_v27  ;;  %v1144_v27 = vld [vmem:[#allocation2 + $0x274] ss:$8 sps:$4 sm:$0xff]   ;;  %v1145_v29 = vld [vmem:[%s1307_s0 + $0x10] ss:$20 sps:$4 sm:$0xff]   ;;  %v1156_v32 = vld [vmem:[%s1310_s3 + $0x68] sm:$0xff]  }
  0x32   :  { %574 = vmatpush1.bf16.msra.mxu1 %v1084_v37  ;;  %v1157_v33 = vld [vmem:[%s1310_s3 + $0x28] sm:$0xff]   ;;  %v1159_v35 = vld [vmem:[%s1310_s3 + $0x30] sm:$0xff]   ;;  %v1161_v37 = vld [vmem:[%s1310_s3 + $0x38] sm:$0xff]  }
  0x33   :  { %575 = vmatprep.subr.bf16.mxu1 %v1088_v38 }
  0x34   :  { %619 = vmatpush1.bf16.msra.mxu0 %v1051_v30  ;;  %v1154_v30 = vld [vmem:[%s1310_s3 + $0x60] sm:$0xff]  }
  0x35   :  { %620 = vmatprep.subr.bf16.mxu0 %v1055_v31  ;;  %v1155_v31 = vld [vmem:[%s1310_s3 + $0x20] sm:$0xff]  }
  0x36   :  { %576 = vmatpush1.bf16.msra.mxu1 %v1090_v41  ;;  %v123_v41 = vlaneseq }
  0x37   :  { %577 = vmatprep.subr.bf16.mxu1 %v1094_v42 }
  0x38   :  { %621 = vmatpush1.bf16.msra.mxu0 %v1057_v34  ;;  %v1158_v34 = vld [vmem:[%s1310_s3 + $0x70] sm:$0xff]  }
  0x39   :  { %622 = vmatprep.subr.bf16.mxu0 %v1061_v36  ;;  %v1160_v36 = vld [vmem:[%s1310_s3 + $0x78] sm:$0xff]  }
  0x3a   :  { %578 = vmatpush1.bf16.msra.mxu1 %v1096_v45  ;;  %v121_v45 = vld [vmem:[%s1309_s2] sm:$0x3] }
  0x3b   :  { %579 = vmatprep.subr.bf16.mxu1 %v1103_v46 }
  0x3c   :  { %623 = vmatpush1.bf16.msra.mxu0 %v1063_v39 }
  0x3d   :  { %624 = vmatprep.subr.bf16.mxu0 %v1067_v40 }
  0x3e   :  { %580 = vmatpush1.bf16.msra.mxu1 %v1105_v49 }
  0x3f   :  { %581 = vmatprep.subr.bf16.mxu1 %v1109_v50 }
  0x40   :  { %625 = vmatpush1.bf16.msra.mxu0 %v1069_v43  ;;  %v124_v43 = vshrl.u32 %v123_v41, 7 }
  0x41   :  { %626 = vmatprep.subr.bf16.mxu0 %v1073_v44 }
  0x42   :  { %582 = vmatpush1.bf16.msra.mxu1 %v1111_v53  ;;  %v125_v44 = vsub.s32 0, %v124_v43  ;;  %v129_v46 = vsub.s32 1, %v124_v43 }
  0x43   :  { %583 = vmatprep.subr.bf16.mxu1 %v1115_v54 }
  0x44   :  { %627 = vmatpush1.bf16.msra.mxu0 %v1075_v47  ;;  %v126_v47 = vrot.slane %v121_v45, %v125_v44 }
  0x45   :  { %628 = vmatprep.subr.bf16.mxu0 %v1079_v48  ;;  %v130_v48 = vrot.slane %v121_v45, %v129_v46 }
  0x46   :  { %584 = vmatpush1.bf16.msra.mxu1 %v1117_v58 }
  0x47   :  { %585 = vmatprep.subr.bf16.mxu1 %v1121_v59 }
  0x48   :  { %629 = vmatpush1.bf16.msra.mxu0 %v1081_v51 }
  0x49   :  { %630 = vmatprep.subr.bf16.mxu0 %v1085_v52 }
  0x4a   :  { %586 = vmatpush1.bf16.msra.mxu1 %v1123_v0 }
  0x4b   :  { %587 = vmatprep.subr.bf16.mxu1 %v1127_v1 }
  0x4c   :  { %631 = vmatpush1.bf16.msra.mxu0 %v1087_v56 }
  0x4d   :  { %632 = vmatprep.subr.bf16.mxu0 %v1091_v57 }
  0x4e   :  { %588 = vmatpush1.bf16.msra.mxu1 %v1129_v3 }
  0x4f   :  { %589 = vmatprep.subr.bf16.mxu1 %v1133_v5 }
  0x50   :  { %633 = vmatpush1.bf16.msra.mxu0 %v1093_v60 }
  0x51   :  { %645 = vmatprep.subr.bf16.mxu0 %v1102_v62 }
  0x52   :  { %590 = vmatpush1.bf16.msra.mxu1 %v1135_v7 }
  0x53   :  { %635 = vmatmul.mubr.bf16.vlgmr.msra.gmra.mrb[0].mxu0 %v1097_v61  ;;  %981 = vmatprep.subr.bf16.mxu1 %v1146_v9 }
  0x54   :  { %646 = vmatpush1.bf16.msra.mxu0 %v1100_v63  ;;  %677 = vmatprep.mubr.bf16.mxu0 %v1189_v8 }
  0x55   :  { %647 = vmatprep.subr.bf16.mxu0 %v1108_v2  ;;  %592 = vmatmul.mubr.bf16.vlgmr.msra.gmra.mrb[0].mxu1 %v1139_v12 }
  0x56   :  { %982 = vmatpush3.bf16.msra.mxu1 %v1147_v13 }
  0x57   :  { %983 = vmatprep.subr.bf16.mxu1 %v1148_v14 }
  0x58   :  { %648 = vmatpush1.bf16.msra.mxu0 %v1106_v4  ;;  %v964_v4 = vld [vmem:[%s1311_s4] ss:$0 sm:$0xff] }
  0x59   :  { %649 = vmatprep.subr.bf16.mxu0 %v1114_v6 }
  0x5a   :  { %984 = vmatpush3.bf16.msra.mxu1 %v1149_v17 }
  0x5b   :  { %985 = vmatprep.subr.bf16.mxu1 %v1150_v18 }
  0x5c   :  { %650 = vmatpush1.bf16.msra.mxu0 %v1112_v10 }
  0x5d   :  { %651 = vmatprep.subr.bf16.mxu0 %v1120_v11 }
  0x5e   :  { %986 = vmatpush3.bf16.msra.mxu1 %v1151_v21 }
  0x5f   :  { %987 = vmatprep.subr.bf16.mxu1 %v1152_v22 }
  0x60   :  { %652 = vmatpush1.bf16.msra.mxu0 %v1118_v15 }
  0x61   :  { %653 = vmatprep.subr.bf16.mxu0 %v1126_v16 }
  0x62   :  { %988 = vmatpush3.bf16.msra.mxu1 %v1153_v25 }
  0x63   :  { %989 = vmatprep.subr.bf16.mxu1 %v1154_v30 }
  0x64   :  { %654 = vmatpush1.bf16.msra.mxu0 %v1124_v19 }
  0x65   :  { %655 = vmatprep.subr.bf16.mxu0 %v1132_v20 }
  0x66   :  { %990 = vmatpush3.bf16.msra.mxu1 %v1155_v31 }
  0x67   :  { %991 = vmatprep.subr.bf16.mxu1 %v1156_v32 }
  0x68   :  { %656 = vmatpush1.bf16.msra.mxu0 %v1130_v23 }
  0x69   :  { %657 = vmatprep.subr.bf16.mxu0 %v1138_v24 }
  0x6a   :  { %992 = vmatpush3.bf16.msra.mxu1 %v1157_v33 }
  0x6b   :  { %993 = vmatprep.subr.bf16.mxu1 %v1158_v34 }
  0x6c   :  { %658 = vmatpush1.bf16.msra.mxu0 %v1136_v26 }
  0x6d   :  { %659 = vmatprep.subr.bf16.mxu0 %v1144_v27 }
  0x6e   :  { %994 = vmatpush3.bf16.msra.mxu1 %v1159_v35 }
  0x6f   :  { %995 = vmatprep.subr.bf16.mxu1 %v1160_v36 }
  0x70   :  { %660 = vmatpush1.bf16.msra.mxu0 %v1142_v28 }
  0x72   :  { %996 = vmatpush3.bf16.msra.mxu1 %v1161_v37 }
  0x73   :  { %678 = vmatmul.mubr.bf16.vlgmr.msra.gmra.mrb[0].mxu0 %v1145_v29 }
 0x128   :  { %v593_v38 = vpop.f32.mrb[0].mxu1 }
 0x129   :  { %v595_v39 = vpop.f32.mrb[1].mxu1  ;;  %v594_v49 = vadd.f32 %v593_v38, %v126_v47 }
 0x12a   :  { %v597_v40 = vpop.f32.mrb[2].mxu1  ;;  %v596_v50 = vadd.f32 %v595_v39, %v130_v48 }
 0x12b   :  { %v599_v42 = vpop.f32.mrb[3].mxu1  ;;  %v598_v52 = vadd.f32 %v597_v40, %v126_v47 }
 0x12c   :  { %v600_v55 = vadd.f32 %v599_v42, %v130_v48 }
 0x146   :  { %v679_v51 = vpop.f32.mrb[0].mxu0 }
 0x147   :  { %v1004_v53 = vadd.f32 %v679_v51, %v594_v49  ;;  %v681_v54 = vpop.f32.mrb[1].mxu0 }
 0x148   :  { %v1006_v56 = vadd.f32 %v681_v54, %v596_v50  ;;  %v683_v57 = vpop.f32.mrb[2].mxu0 }
 0x149   :  { %v1008_v58 = vadd.f32 %v683_v57, %v598_v52  ;;  %v685_v59 = vpop.f32.mrb[3].mxu0  ;;  %v688_v61 = vmax.f32 %v1004_v53, 0.0 }
 0x14a   :  { %v1010_v60 = vadd.f32 %v685_v59, %v600_v55  ;;  %v689_v63 = vmax.f32 %v1006_v56, 0.0 }
 0x14b   :  { %v690_v62 = vmax.f32 %v1008_v58, 0.0 }
 0x14c   :  { %v691_v0 = vmax.f32 %v1010_v60, 0.0 }
 0x14d   :  { %v692_v1 = vpack.c.bf16 %v690_v62, %v688_v61 }
 0x14e   :  { %v693_v2 = vpack.c.bf16 %v691_v0, %v689_v63 }
 0x150   :  { %861 = vmatprep.mubr.bf16.mxu1 %v693_v2 }
 0x151   :  { %862 = vmatmul.mubr.bf16.vlgmr.msra.gmra.mrb[4].mxu1 %v692_v1 }
 0x224   :  { %v997_v3 = vpop.f32.mrb[4].mxu1 }
 0x225   :  { %v998_v5 = vpop.f32.mrb[5].mxu1 }
 0x226   :  { %v999_v6 = vadd.f32 %v998_v5, %v997_v3  ;;  %v1000_v7 = vpop.f32.mrb[6].mxu1 }
 0x227   :  { %v1001_v8 = vpop.f32.mrb[7].mxu1 }
 0x228   :  { %v864_v9 = vadd.f32 %v999_v6, %v964_v4  ;;  %v1002_v10 = vadd.f32 %v1001_v8, %v1000_v7 }
 0x22a   :  { %v870_v11 = vmax.f32 %v864_v9, 0.0  ;;  %v867_v12 = vadd.f32 %v1002_v10, %v964_v4 }
 0x22c   :  { %872 = vst [vmem:[%s1312_s5] sm:$0xff] %v870_v11  ;;  %v871_v13 = vmax.f32 %v867_v12, 0.0 }
 0x22e   :  { %873 = vst [vmem:[%s1312_s5 + $0x8] sm:$0xff] %v871_v13 }
 0x22f   :  { %878 = vsyncpa [#allocation3], 1 }

</bundles_post_ra>
